<compile_context>
chip_gen: v7x
topology: tpu7x:2x2x1
jax: 0.10.0
libtpu: 0.0.40
codegen_flags: <defaults>
</compile_context>

<pallas_src>
import functools

import jax
import jax.numpy as jnp
from jax.experimental import pallas as pl
from jax.experimental.pallas import tpu as pltpu

LANE = 128  # TPU vreg lane width


def _round_up(a, b):
    return (a + b - 1) // b * b


def _cdiv(a, b):
    return (a + b - 1) // b


def _gap_kernel(x_ref, mean_ref, acc_ref, *, n_strips, rem, inv_hw):
    # x_ref:    (1, tile_c, tile_hw)  current (batch, channel-tile, HW-tile)
    # mean_ref: (1, tile_c, 1)        per-channel spatial mean (f32)
    # acc_ref:  (tile_c, LANE) f32    per-lane partial sums; resident across t
    # rem: number of VALID elements in the LAST HW tile (1..tile_hw), static.
    t = pl.program_id(2)
    last_t = pl.num_programs(2) - 1

    @pl.when(t == 0)
    def _():
        acc_ref[...] = jnp.zeros_like(acc_ref)

    tile_c = acc_ref.shape[0]
    tile_hw = n_strips * LANE

    def strip(s):
        return x_ref[0, :, pl.ds(s * LANE, LANE)].astype(jnp.float32)

    def tree_sum(vals):
        # balanced pairwise tree -> short dependency chains, one acc RMW
        while len(vals) > 1:
            nxt = [vals[i] + vals[i + 1] for i in range(0, len(vals) - 1, 2)]
            if len(vals) % 2:
                nxt.append(vals[-1])
            vals = nxt
        return vals[0]

    def full_accum():
        acc_ref[...] += tree_sum([strip(s) for s in range(n_strips)])

    if rem == tile_hw:
        # Every HW tile is exactly full -> no masking anywhere.
        full_accum()
    else:
        @pl.when(t != last_t)
        def _():
            full_accum()

        @pl.when(t == last_t)
        def _():
            # Only the last HW tile is partial; OOB lanes hold unspecified
            # data (no padding copy was made), so mask them before adding.
            lane_idx = jax.lax.broadcasted_iota(jnp.int32, (tile_c, LANE), 1)
            vals = []
            for s in range(n_strips):
                lo = s * LANE
                if lo + LANE <= rem:          # strip fully inside HW
                    vals.append(strip(s))
                elif lo < rem:                # boundary strip -> mask lanes
                    vals.append(jnp.where(lane_idx < (rem - lo), strip(s), 0.0))
                # else: strip entirely past HW -> skip (no load, no add)
            acc_ref[...] += tree_sum(vals)

    @pl.when(t == last_t)
    def _():
        # Single cross-lane (XLU) reduce at the very end; divide by TRUE HW.
        mean_ref[0] = jnp.sum(acc_ref[...], axis=-1, keepdims=True) * inv_hw


def aspp_pooling(x, conv_w, bn_gamma, bn_beta, bn_mean, bn_var,
                 *, eps=1e-5, align_corners=False,
                 block_bytes=2 << 20, cin_tile_cap=256):
    """x: (N, C_in, H, W) NCHW.  Returns (N, C_out, H, W)."""
    del align_corners  # 1x1 -> HxW bilinear upsample is a pure broadcast either way
    N, C_in, H, W = x.shape
    C_out = conv_w.shape[0]
    HW = H * W
    itemsize = jnp.dtype(x.dtype).itemsize

    # ---- channel tile: dtype-native sublane alignment, capped, megacore-aware
    c_align = {4: 8, 2: 16, 1: 32}.get(itemsize, 8)
    tile_c = min(_round_up(C_in, c_align),
                 max(_round_up(cin_tile_cap, c_align), c_align))
    n_ctiles = _cdiv(C_in, tile_c)
    if N * n_ctiles < 2 and C_in > c_align:
        # Guarantee >= 2 "parallel" tiles so both v7x TensorCores get work at N=1.
        tile_c = _round_up(_cdiv(C_in, 2), c_align)
        n_ctiles = _cdiv(C_in, tile_c)

    # ---- HW tile: single tile if it fits the per-buffer byte budget,
    #      otherwise the smallest equal split that does.
    hw_full = _round_up(HW, LANE)
    max_hw = max(LANE, (block_bytes // (tile_c * itemsize)) // LANE * LANE)
    if hw_full <= max_hw:
        tile_hw = hw_full
    else:
        k = max(1, _cdiv(hw_full, max_hw))
        while _round_up(_cdiv(HW, k), LANE) > max_hw:
            k += 1
        tile_hw = _round_up(_cdiv(HW, k), LANE)
    n_htiles = _cdiv(HW, tile_hw)
    n_strips = tile_hw // LANE
    rem = HW - (n_htiles - 1) * tile_hw      # valid elements in last HW tile

    x_flat = x.reshape(N, C_in, HW)          # no padding copy, no extra HBM traffic

    kernel = functools.partial(_gap_kernel, n_strips=n_strips, rem=rem,
                               inv_hw=1.0 / HW)

    means = pl.pallas_call(
        kernel,
        out_shape=jax.ShapeDtypeStruct((N, C_in, 1), jnp.float32),
        grid_spec=pltpu.PrefetchScalarGridSpec(
            num_scalar_prefetch=0,
            grid=(N, n_ctiles, n_htiles),           # HW reduction axis last
            in_specs=[
                pl.BlockSpec((1, tile_c, tile_hw), lambda n, c, t: (n, c, t)),
            ],
            out_specs=pl.BlockSpec((1, tile_c, 1), lambda n, c, t: (n, c, 0)),
            scratch_shapes=[pltpu.VMEM((tile_c, LANE), jnp.float32)],
        ),
        compiler_params=pltpu.CompilerParams(
            dimension_semantics=("parallel", "parallel", "arbitrary")),
    )(x_flat)

    means = means[:, :, 0]                           # (N, C_in) f32

    # Tiny epilogue in plain JAX (fuses downstream): folded 1x1 conv + BN,
    # ReLU, then 1x1 -> HxW "bilinear" upsample == broadcast.
    # TODO(synk): training-mode BatchNorm (batch statistics) is not implemented;
    #             running statistics (inference) are folded into the conv.
    scale = bn_gamma.astype(jnp.float32) / jnp.sqrt(bn_var.astype(jnp.float32) + eps)
    w_fold = conv_w.reshape(C_out, C_in).astype(jnp.float32) * scale[:, None]
    bias = bn_beta.astype(jnp.float32) - bn_mean.astype(jnp.float32) * scale
    y = means @ w_fold.T + bias[None, :]             # (N, C_out)
    y = jnp.maximum(y, 0.0).astype(x.dtype)
    return jnp.broadcast_to(y[:, :, None, None], (N, C_out, H, W))


def _reference(x, conv_w, gamma, beta, mean, var, eps=1e-5):
    pooled = jnp.mean(x, axis=(2, 3), keepdims=True)                  # (N,Cin,1,1)
    y = jnp.einsum('oc,ncij->noij', conv_w.reshape(conv_w.shape[0], -1), pooled)
    y = (y - mean[None, :, None, None]) / jnp.sqrt(var[None, :, None, None] + eps)
    y = y * gamma[None, :, None, None] + beta[None, :, None, None]
    y = jnp.maximum(y, 0.0)
    return jnp.broadcast_to(y, (x.shape[0], conv_w.shape[0], x.shape[2], x.shape[3]))


if __name__ == "__main__":
    key = jax.random.PRNGKey(0)
    k1, k2, k3, k4, k5, k6 = jax.random.split(key, 6)

    # Small shapes that exercise every path: HW=225 is not a lane multiple
    # (masked last strip), C_in=12 is not a sublane multiple (partial channel
    # block, rows >= C_in discarded), plus a batch axis.
    N, C_in, C_out, H, W = 2, 12, 8, 15, 15

    x = jax.random.normal(k1, (N, C_in, H, W), dtype=jnp.float32)
    conv_w = jax.random.normal(k2, (C_out, C_in, 1, 1), dtype=jnp.float32) * 0.1
    bn_gamma = jax.random.uniform(k3, (C_out,), dtype=jnp.float32, minval=0.5, maxval=1.5)
    bn_beta = jax.random.normal(k4, (C_out,), dtype=jnp.float32) * 0.1
    bn_mean = jax.random.normal(k5, (C_out,), dtype=jnp.float32) * 0.1
    bn_var = jax.random.uniform(k6, (C_out,), dtype=jnp.float32, minval=0.5, maxval=1.5)

    ref = _reference(x, conv_w, bn_gamma, bn_beta, bn_mean, bn_var)

    # 1) Default tiling: single HW tile (tile_hw = round_up(225,128) = 256,
    #    masked boundary strip inside one grid step).
    out = aspp_pooling(x, conv_w, bn_gamma, bn_beta, bn_mean, bn_var)
    out = jax.block_until_ready(out)
    assert out.shape == (N, C_out, H, W)
    assert jnp.allclose(out, ref, atol=1e-5, rtol=1e-5)

    # 2) Tiny block budget to force the multi-HW-tile reduction path
    #    (accumulator across "arbitrary" axis + masked last tile).
    out2 = aspp_pooling(x, conv_w, bn_gamma, bn_beta, bn_mean, bn_var,
                        block_bytes=4096)
    out2 = jax.block_until_ready(out2)
    assert jnp.allclose(out2, ref, atol=1e-5, rtol=1e-5)

    # 3) bf16 input path (16-aligned channel tiles, f32 accumulation).
    xb = x.astype(jnp.bfloat16)
    outb = aspp_pooling(xb, conv_w, bn_gamma, bn_beta, bn_mean, bn_var)
    outb = jax.block_until_ready(outb)
    refb = _reference(xb.astype(jnp.float32), conv_w, bn_gamma, bn_beta, bn_mean, bn_var)
    assert jnp.allclose(outb.astype(jnp.float32), refb, atol=2e-2, rtol=2e-2)

    print("KERNEL_OK")
</pallas_src>

<mosaic_0001>
module attributes {stable_mosaic.version = 11 : i64} {
  func.func @_gap_kernel(%arg0: i32, %arg1: i32, %arg2: i32, %arg3: memref<1x16x256xf32, #tpu.memory_space<vmem>>, %arg4: memref<1x16x1xf32, #tpu.memory_space<vmem>>, %arg5: memref<16x128xf32, #tpu.memory_space<vmem>>) attributes {dimension_semantics = [#tpu.dimension_semantics<parallel>, #tpu.dimension_semantics<parallel>, #tpu.dimension_semantics<arbitrary>], iteration_bounds = array<i64: 2, 1, 1>, scalar_prefetch = 0 : i64, scratch_operands = 1 : i64, tpu.core_type = #tpu.core_type<tc>, window_params = [{transform_indices = @transform_0, window_bounds = array<i64: 1, 16, 256>}, {transform_indices = @transform_1, window_bounds = array<i64: 1, 16, 1>}]} {
    %c0_i32 = arith.constant 0 : i32
    %0 = arith.cmpi eq, %arg2, %c0_i32 : i32
    %1 = arith.extui %0 : i1 to i32
    %c0_i32_0 = arith.constant 0 : i32
    %2 = arith.cmpi ne, %1, %c0_i32_0 : i32
    scf.if %2 {
      %cst = arith.constant 0.000000e+00 : f32
      %12 = vector.broadcast %cst : f32 to vector<16x128xf32>
      %c0 = arith.constant 0 : index
      %c0_7 = arith.constant 0 : index
      %13 = vector.load %arg5[%c0, %c0_7] : memref<16x128xf32, #tpu.memory_space<vmem>>, vector<16x128xf32>
      tpu.vector_store %arg5[%c0, %c0_7], %12 {strides = array<i32>} : memref<16x128xf32, #tpu.memory_space<vmem>>, vector<16x128xf32>,
    } else {
    }
    %c0_i32_1 = arith.constant 0 : i32
    %3 = arith.cmpi ne, %arg2, %c0_i32_1 : i32
    %4 = arith.extui %3 : i1 to i32
    %c0_i32_2 = arith.constant 0 : i32
    %5 = arith.cmpi ne, %4, %c0_i32_2 : i32
    scf.if %5 {
      %c0 = arith.constant 0 : index
      %c0_7 = arith.constant 0 : index
      %12 = vector.load %arg5[%c0, %c0_7] : memref<16x128xf32, #tpu.memory_space<vmem>>, vector<16x128xf32>
      %c0_8 = arith.constant 0 : index
      %c0_9 = arith.constant 0 : index
      %c0_10 = arith.constant 0 : index
      %13 = vector.load %arg3[%c0_8, %c0_9, %c0_10] : memref<1x16x256xf32, #tpu.memory_space<vmem>>, vector<1x16x128xf32>
      %14 = vector.shape_cast %13 : vector<1x16x128xf32> to vector<16x128xf32>
      %c0_11 = arith.constant 0 : index
      %c0_12 = arith.constant 0 : index
      %c128 = arith.constant 128 : index
      %15 = vector.load %arg3[%c0_11, %c0_12, %c128] : memref<1x16x256xf32, #tpu.memory_space<vmem>>, vector<1x16x128xf32>
      %16 = vector.shape_cast %15 : vector<1x16x128xf32> to vector<16x128xf32>
      %17 = arith.addf %14, %16 : vector<16x128xf32>
      %18 = arith.addf %12, %17 : vector<16x128xf32>
      %c0_13 = arith.constant 0 : index
      %c0_14 = arith.constant 0 : index
      %19 = vector.load %arg5[%c0_13, %c0_14] : memref<16x128xf32, #tpu.memory_space<vmem>>, vector<16x128xf32>
      tpu.vector_store %arg5[%c0_13, %c0_14], %18 {strides = array<i32>} : memref<16x128xf32, #tpu.memory_space<vmem>>, vector<16x128xf32>,
    } else {
    }
    %c0_i32_3 = arith.constant 0 : i32
    %6 = arith.cmpi eq, %arg2, %c0_i32_3 : i32
    %7 = arith.extui %6 : i1 to i32
    %c0_i32_4 = arith.constant 0 : i32
    %8 = arith.cmpi ne, %7, %c0_i32_4 : i32
    scf.if %8 {
      %12 = tpu.iota {dimensions = array<i32: 1>} : vector<16x128xi32>
      %c0 = arith.constant 0 : index
      %c0_7 = arith.constant 0 : index
      %c0_8 = arith.constant 0 : index
      %13 = vector.load %arg3[%c0, %c0_7, %c0_8] : memref<1x16x256xf32, #tpu.memory_space<vmem>>, vector<1x16x128xf32>
      %14 = vector.shape_cast %13 : vector<1x16x128xf32> to vector<16x128xf32>
      %c97_i32 = arith.constant 97 : i32
      %15 = vector.broadcast %c97_i32 : i32 to vector<16x128xi32>
      %16 = arith.cmpi slt, %12, %15 : vector<16x128xi32>
      %c0_9 = arith.constant 0 : index
      %c0_10 = arith.constant 0 : index
      %c128 = arith.constant 128 : index
      %17 = vector.load %arg3[%c0_9, %c0_10, %c128] : memref<1x16x256xf32, #tpu.memory_space<vmem>>, vector<1x16x128xf32>
      %18 = vector.shape_cast %17 : vector<1x16x128xf32> to vector<16x128xf32>
      %cst = arith.constant 0.000000e+00 : f32
      %19 = vector.broadcast %cst : f32 to vector<16x128xf32>
      %20 = arith.select %16, %18, %19 : vector<16x128xi1>, vector<16x128xf32>
      %c0_11 = arith.constant 0 : index
      %c0_12 = arith.constant 0 : index
      %21 = vector.load %arg5[%c0_11, %c0_12] : memref<16x128xf32, #tpu.memory_space<vmem>>, vector<16x128xf32>
      %22 = arith.addf %14, %20 : vector<16x128xf32>
      %23 = arith.addf %21, %22 : vector<16x128xf32>
      %c0_13 = arith.constant 0 : index
      %c0_14 = arith.constant 0 : index
      %24 = vector.load %arg5[%c0_13, %c0_14] : memref<16x128xf32, #tpu.memory_space<vmem>>, vector<16x128xf32>
      tpu.vector_store %arg5[%c0_13, %c0_14], %23 {strides = array<i32>} : memref<16x128xf32, #tpu.memory_space<vmem>>, vector<16x128xf32>,
    } else {
    }
    %c0_i32_5 = arith.constant 0 : i32
    %9 = arith.cmpi eq, %arg2, %c0_i32_5 : i32
    %10 = arith.extui %9 : i1 to i32
    %c0_i32_6 = arith.constant 0 : i32
    %11 = arith.cmpi ne, %10, %c0_i32_6 : i32
    scf.if %11 {
      %c0 = arith.constant 0 : index
      %c0_7 = arith.constant 0 : index
      %12 = vector.load %arg5[%c0, %c0_7] : memref<16x128xf32, #tpu.memory_space<vmem>>, vector<16x128xf32>
      %cst = arith.constant dense<0.000000e+00> : vector<16xf32>
      %13 = vector.multi_reduction <add>, %12, %cst [1] : vector<16x128xf32> to vector<16xf32>
      %14 = vector.shape_cast %13 : vector<16xf32> to vector<16x1xf32>
      %cst_8 = arith.constant 0.00444444455 : f32
      %15 = vector.broadcast %cst_8 : f32 to vector<16x1xf32>
      %16 = arith.mulf %14, %15 : vector<16x1xf32>
      %c0_9 = arith.constant 0 : index
      %c0_10 = arith.constant 0 : index
      %c0_11 = arith.constant 0 : index
      %17 = vector.load %arg4[%c0_9, %c0_10, %c0_11] : memref<1x16x1xf32, #tpu.memory_space<vmem>>, vector<1x16x1xf32>
      %18 = vector.shape_cast %17 : vector<1x16x1xf32> to vector<16x1xf32>
      %19 = vector.shape_cast %16 : vector<16x1xf32> to vector<1x16x1xf32>
      tpu.vector_store %arg4[%c0_9, %c0_10, %c0_11], %19 {strides = array<i32>} : memref<1x16x1xf32, #tpu.memory_space<vmem>>, vector<1x16x1xf32>,
    } else {
    }
    return
  }
  func.func @transform_0(%arg0: i32, %arg1: i32, %arg2: i32) -> (i32, i32, i32) {
    %c0_i32 = arith.constant 0 : i32
    return %arg0, %arg1, %arg2 : i32, i32, i32
  }
  func.func @transform_1(%arg0: i32, %arg1: i32, %arg2: i32) -> (i32, i32, i32) {
    %c0_i32 = arith.constant 0 : i32
    %c0_i32_0 = arith.constant 0 : i32
    return %arg0, %arg1, %c0_i32 : i32, i32, i32
  }
}

</mosaic_0001>

<bundles_post_ra>
// kernel: tpu_custom_call.1
= control target key start
LH: loop header
LB: loop body
LE: loop exit
PB: predicated region body
PF: predicated region fallthrough
CT: control target
= control target key end

     0   :  { %s402_s6 = smov 0   ;;  %s404_s7 = smov 0   ;;  %s435_s0 = inlined_call_operand.vmem [shape: f32[2,12,225], index: 0, kind: input, shape index: {}]   ;;  %s436_s1 = inlined_call_operand.vmem [shape: f32[2,12,1], index: 1, kind: output, shape index: {}]  }
   0x1   :  { %s406_s8 = smov 0  }
   0x2 LB: > { %s30_s9 = sadd.s32 1, %s386_s7  ;;  %p335_p0 = scmp.ge.s32.totalorder %s390_s8, 1  ;;  %s390_s8 = sphi %s406_s8, %s11_s8   ;;  %s386_s7 = sphi %s404_s7, %s438_s7   ;;  %s382_s6 = sphi %s402_s6, %s437_s6  }
   0x3   : > { %p32_p1 = scmp.ge.s32.totalorder %s30_s9, 2  ;;  %p123_p2 = scmp.lt.s32.totalorder %s390_s8, 3 }
   0x5   : > { %s440_s9 = smov (%p32_p1, %s30_s9), 0  ;;  %p124_p3 = pnand %p335_p0, %p123_p2 }
   0x6   : > { %p158_p4 = scmp.lt.s32.totalorder (!%p124_p3), %s382_s6, 1  ;;  %v207_v0 = vlaneseq (!%p124_p3)  ;;  %vm232_vm1 = vcmask (!%p124_p3), 7168  }
   0x7   : > { %127 = sbr.rel (%p124_p3) target bundleno = 170 (0xaa), region = 24 }
   0x8   : > { %v208_v1 = vand.u32 (!%p124_p3), 127, %v207_v0 }
   0xa   : > { %vm211_vm0 = vcmp.lt.s32.totalorder (!%p124_p3), %v208_v1, 97 }
   0xe   : > { %s442_s6 = smov (!%p158_p4, %s382_s6), 1 }
   0xf   : > { %s342_s10 = sshll.u32 %s442_s6, 5  ;;  %s343_s14 = sshll.u32 %s442_s6, 4 }
  0x10   : > { %s169_s13 = scalar_lea.vmem %s435_s0, %s342_s10  ;;  %s180_s17 = scalar_lea.vmem %s436_s1, %s343_s14 }
  0x11   : > { %v209_v2 = vld [vmem:[%s169_s13] sm:$0xff]  ;;  %v212_v3 = vld [vmem:[%s169_s13 + $0x8] sm:$0xff]  ;;  %v210_v5 = vld [vmem:[%s169_s13 + $0x10] sm:$0xff] }
  0x12   : > { %v214_v4 = vsel %vm211_vm0, %v212_v3, 0.0  ;;  %v213_v6 = vld [vmem:[%s169_s13 + $0x18] sm:$0xff] }
  0x13   : > { %v218_v7 = vadd.f32 %v214_v4, %v209_v2  ;;  %v215_v8 = vsel %vm211_vm0, %v213_v6, 0.0 }
  0x14   : > { %v219_v9 = vadd.f32 %v215_v8, %v210_v5 }
  0x15   : > { %226 = vadd.xlane.f32.xlu0 %v218_v7 }
  0x19   : > { %228 = vadd.xlane.f32.xlu0 %v219_v9 }
  0xa2   : > { %v227_v10 = vpop.xlane.xlu0 %226 }
  0xa3   : > { %v230_v11 = vmul.f32 0.0044444446, %v227_v10 }
  0xa5   : > { %233 = vst.msk [vmem:[%s180_s17] sm:$0xff] %vm232_vm1, %v230_v11 }
  0xa6   : > { %v229_v12 = vpop.xlane.xlu0 %228 }
  0xa7   : > { %v231_v13 = vmul.f32 0.0044444446, %v229_v12 }
  0xa9   : > { %234 = vst.msk [vmem:[%s180_s17 + $0x8] sm:$0xff] %vm232_vm1, %v231_v13 }
  0xaa PF: > { %s11_s8 = sadd.s32 1, %s390_s8   ;;  %s437_s6 = smov %s386_s7 }
  0xab   : > { %p8_p5 = scmp.ge.s32.totalorder %s11_s8, 4   ;;  %s438_s7 = smov %s440_s9 }
  0xad   :  { %10 = sbr.rel (!%p8_p5) target bundleno = 2 (0x2), region = 66 }

</bundles_post_ra>
